<compile_context>
chip_gen: v7x
topology: tpu7x:2x2x1
jax: 0.10.0
libtpu: 0.0.40
codegen_flags: <defaults>
</compile_context>

<pallas_src>
import jax
import jax.numpy as jnp
from jax import lax
from jax.experimental import pallas as pl
from jax.experimental.pallas import tpu as pltpu


_VMEM = pl.BlockSpec(memory_space=pltpu.MemorySpace.VMEM)


# ----------------------------- fused Pallas kernel ----------------------------

def _make_decoder_step_kernel(n_layers, hid_dim, output_dim):
    """One fused decode step: embedding + n_layers LSTM cells (seq len 1) + Linear."""
    H = hid_dim

    def kernel(*refs):
        # inputs: ids, emb_table, h_in, c_in, [w_x_t, w_h_t, bias] * n_layers, out_w_t, out_b
        ids_ref, emb_ref, h_in_ref, c_in_ref = refs[0], refs[1], refs[2], refs[3]
        base = 4
        layer_refs = refs[base: base + 3 * n_layers]
        out_w_ref = refs[base + 3 * n_layers]
        out_b_ref = refs[base + 3 * n_layers + 1]
        # outputs
        pred_ref = refs[base + 3 * n_layers + 2]
        h_out_ref = refs[base + 3 * n_layers + 3]
        c_out_ref = refs[base + 3 * n_layers + 4]

        B = ids_ref.shape[0]

        # ---- Embedding lookup fused as a one-hot matmul (MXU, no gather) ----
        ids = ids_ref[...]                                            # (B, 1) int32
        vocab = lax.broadcasted_iota(jnp.int32, (B, output_dim), 1)   # (B, O)
        onehot = (vocab == ids).astype(jnp.float32)                   # (B, O)
        x = jnp.dot(onehot, emb_ref[...],
                    preferred_element_type=jnp.float32)               # (B, emb_dim)
        # TODO(synk): dropout is identity here (inference / eval mode).

        # ---- n_layers stacked LSTM cells, weights resident in VMEM ----
        for layer in range(n_layers):
            w_x_t = layer_refs[3 * layer][...]       # (in_dim, 4H) pre-transposed
            w_h_t = layer_refs[3 * layer + 1][...]   # (H, 4H)     pre-transposed
            bias = layer_refs[3 * layer + 2][...]    # (1, 4H)     b_ih + b_hh
            h = h_in_ref[layer].astype(jnp.float32)  # (B, H)
            c = c_in_ref[layer].astype(jnp.float32)  # (B, H)

            # gates: (B, 4H) — lane-dense (128 lanes) for H=32. PyTorch gate order i,f,g,o.
            gates = (jnp.dot(x, w_x_t, preferred_element_type=jnp.float32)
                     + jnp.dot(h, w_h_t, preferred_element_type=jnp.float32)
                     + bias)

            # Full-vreg nonlinearities, gate selection via lane mask (VPU+EUP only).
            lane = lax.broadcasted_iota(jnp.int32, gates.shape, 1)
            is_g_gate = (lane >= 2 * H) & (lane < 3 * H)
            act = jnp.where(is_g_gate, jnp.tanh(gates), jax.nn.sigmoid(gates))

            i_g = act[:, 0 * H:1 * H]
            f_g = act[:, 1 * H:2 * H]
            g_g = act[:, 2 * H:3 * H]
            o_g = act[:, 3 * H:4 * H]

            c_new = f_g * c + i_g * g_g
            h_new = o_g * jnp.tanh(c_new)

            h_out_ref[layer] = h_new.astype(h_out_ref.dtype)
            c_out_ref[layer] = c_new.astype(c_out_ref.dtype)
            x = h_new  # inter-layer dropout is identity in eval mode

        # ---- Output projection: pred = h_top @ W_out^T + b_out ----
        pred_ref[...] = (jnp.dot(x, out_w_ref[...],
                                 preferred_element_type=jnp.float32)
                         + out_b_ref[...]).astype(pred_ref.dtype)

    return kernel


# ----------------------------- Decoder module --------------------------------

class Decoder:
    """JAX/Pallas port of the PyTorch Decoder (eval-mode forward)."""

    def __init__(self, output_dim, emb_dim, hid_dim, n_layers, dropout, key):
        self.output_dim = output_dim
        self.emb_dim = emb_dim
        self.hid_dim = hid_dim
        self.n_layers = n_layers
        self.dropout = dropout  # identity in eval mode

        keys = jax.random.split(key, 1 + 4 * n_layers + 2)
        k = iter(keys)

        # nn.Embedding(output_dim, emb_dim): weight ~ N(0, 1)
        self.embedding = jax.random.normal(next(k), (output_dim, emb_dim), jnp.float32)

        # nn.LSTM(emb_dim, hid_dim, n_layers): uniform(-1/sqrt(H), 1/sqrt(H)).
        # Store weights PRE-TRANSPOSED and biases PRE-COMBINED (done once, not per step).
        bound = 1.0 / float(jnp.sqrt(jnp.float32(hid_dim)))
        self.layer_params = []  # flat list: [w_x_t, w_h_t, bias] per layer
        for layer in range(n_layers):
            in_dim = emb_dim if layer == 0 else hid_dim
            w_ih = jax.random.uniform(next(k), (4 * hid_dim, in_dim), jnp.float32, -bound, bound)
            w_hh = jax.random.uniform(next(k), (4 * hid_dim, hid_dim), jnp.float32, -bound, bound)
            b_ih = jax.random.uniform(next(k), (4 * hid_dim,), jnp.float32, -bound, bound)
            b_hh = jax.random.uniform(next(k), (4 * hid_dim,), jnp.float32, -bound, bound)
            self.layer_params += [
                jnp.asarray(w_ih.T),                              # (in_dim, 4H)
                jnp.asarray(w_hh.T),                              # (H, 4H)
                (b_ih + b_hh).reshape(1, 4 * hid_dim),            # (1, 4H)
            ]

        # nn.Linear(hid_dim, output_dim), pre-transposed.
        out_w = jax.random.uniform(next(k), (output_dim, hid_dim), jnp.float32, -bound, bound)
        out_b = jax.random.uniform(next(k), (output_dim,), jnp.float32, -bound, bound)
        self.out_w_t = jnp.asarray(out_w.T)                       # (H, O)
        self.out_b = out_b.reshape(1, output_dim)                 # (1, O)

        self._kernel = _make_decoder_step_kernel(n_layers, hid_dim, output_dim)
        self._step = jax.jit(self._forward)

    def _forward(self, input_ids, hidden, cell):
        B = input_ids.shape[0]
        ids2d = input_ids.reshape(B, 1).astype(jnp.int32)
        n_in = 4 + 3 * self.n_layers + 2

        prediction, hidden_out, cell_out = pl.pallas_call(
            self._kernel,
            out_shape=(
                jax.ShapeDtypeStruct((B, self.output_dim), jnp.float32),
                jax.ShapeDtypeStruct((self.n_layers, B, self.hid_dim), jnp.float32),
                jax.ShapeDtypeStruct((self.n_layers, B, self.hid_dim), jnp.float32),
            ),
            in_specs=[_VMEM] * n_in,
            out_specs=(_VMEM, _VMEM, _VMEM),
        )(ids2d, self.embedding, hidden, cell,
          *self.layer_params, self.out_w_t, self.out_b)

        return prediction, hidden_out, cell_out

    def __call__(self, input_ids, hidden, cell):
        """input_ids: (B,) int32; hidden, cell: (n_layers, B, hid_dim).
        Returns (prediction (B, output_dim), hidden, cell)."""
        return self._step(input_ids, hidden, cell)


# ----------------------------------- main -------------------------------------

if __name__ == "__main__":
    OUTPUT_DIM = 32   # vocab size
    EMB_DIM = 16
    HID_DIM = 32
    N_LAYERS = 2
    DROPOUT = 0.5
    BATCH = 4

    root = jax.random.PRNGKey(0)
    k_param, k_tok, k_h, k_c = jax.random.split(root, 4)

    dec = Decoder(OUTPUT_DIM, EMB_DIM, HID_DIM, N_LAYERS, DROPOUT, k_param)

    input_ids = jax.random.randint(k_tok, (BATCH,), 0, OUTPUT_DIM, dtype=jnp.int32)
    hidden = jax.random.normal(k_h, (N_LAYERS, BATCH, HID_DIM), jnp.float32)
    cell = jax.random.normal(k_c, (N_LAYERS, BATCH, HID_DIM), jnp.float32)

    prediction, hidden_out, cell_out = dec(input_ids, hidden, cell)
    jax.block_until_ready((prediction, hidden_out, cell_out))

    assert prediction.shape == (BATCH, OUTPUT_DIM)
    assert hidden_out.shape == (N_LAYERS, BATCH, HID_DIM)
    assert cell_out.shape == (N_LAYERS, BATCH, HID_DIM)
    assert bool(jnp.all(jnp.isfinite(prediction)))
    assert bool(jnp.all(jnp.isfinite(hidden_out)))
    assert bool(jnp.all(jnp.isfinite(cell_out)))

    print("KERNEL_OK")
</pallas_src>

<mosaic_0001>
module attributes {stable_mosaic.version = 11 : i64} {
  func.func @kernel(%arg0: memref<4x1xi32, #tpu.memory_space<vmem>>, %arg1: memref<32x16xf32, #tpu.memory_space<vmem>>, %arg2: memref<2x4x32xf32, #tpu.memory_space<vmem>>, %arg3: memref<2x4x32xf32, #tpu.memory_space<vmem>>, %arg4: memref<16x128xf32, #tpu.memory_space<vmem>>, %arg5: memref<32x128xf32, #tpu.memory_space<vmem>>, %arg6: memref<1x128xf32, #tpu.memory_space<vmem>>, %arg7: memref<32x128xf32, #tpu.memory_space<vmem>>, %arg8: memref<32x128xf32, #tpu.memory_space<vmem>>, %arg9: memref<1x128xf32, #tpu.memory_space<vmem>>, %arg10: memref<32x32xf32, #tpu.memory_space<vmem>>, %arg11: memref<1x32xf32, #tpu.memory_space<vmem>>, %arg12: memref<4x32xf32, #tpu.memory_space<vmem>>, %arg13: memref<2x4x32xf32, #tpu.memory_space<vmem>>, %arg14: memref<2x4x32xf32, #tpu.memory_space<vmem>>) attributes {dimension_semantics = [], scalar_prefetch = 0 : i64, scratch_operands = 0 : i64, tpu.core_type = #tpu.core_type<tc>} {
    %c0 = arith.constant 0 : index
    %c0_0 = arith.constant 0 : index
    %0 = vector.load %arg0[%c0, %c0_0] : memref<4x1xi32, #tpu.memory_space<vmem>>, vector<4x1xi32>
    %1 = tpu.iota {dimensions = array<i32: 1>} : vector<4x32xi32>
    %2 = vector.broadcast %0 : vector<4x1xi32> to vector<4x32xi32>
    %3 = arith.cmpi eq, %1, %2 : vector<4x32xi32>
    %4 = arith.extui %3 : vector<4x32xi1> to vector<4x32xi32>
    %5 = arith.sitofp %4 : vector<4x32xi32> to vector<4x32xf32>
    %c0_1 = arith.constant 0 : index
    %c0_2 = arith.constant 0 : index
    %6 = vector.load %arg1[%c0_1, %c0_2] : memref<32x16xf32, #tpu.memory_space<vmem>>, vector<32x16xf32>
    %cst = arith.constant dense<0.000000e+00> : vector<4x16xf32>
    %7 = tpu.matmul %5, %6, %cst {dimension_numbers = #tpu.dot_dimension_numbers<[1], [0], [0], [1], [0, 0, 1, 1], [], []>} : vector<4x32xf32>, vector<32x16xf32>, vector<4x16xf32> -> vector<4x16xf32>
    %c0_3 = arith.constant 0 : index
    %c0_4 = arith.constant 0 : index
    %8 = vector.load %arg4[%c0_3, %c0_4] : memref<16x128xf32, #tpu.memory_space<vmem>>, vector<16x128xf32>
    %c0_5 = arith.constant 0 : index
    %c0_6 = arith.constant 0 : index
    %9 = vector.load %arg5[%c0_5, %c0_6] : memref<32x128xf32, #tpu.memory_space<vmem>>, vector<32x128xf32>
    %c0_7 = arith.constant 0 : index
    %c0_8 = arith.constant 0 : index
    %10 = vector.load %arg6[%c0_7, %c0_8] : memref<1x128xf32, #tpu.memory_space<vmem>>, vector<1x128xf32>
    %c0_9 = arith.constant 0 : index
    %c0_10 = arith.constant 0 : index
    %c0_11 = arith.constant 0 : index
    %11 = vector.load %arg2[%c0_9, %c0_10, %c0_11] : memref<2x4x32xf32, #tpu.memory_space<vmem>>, vector<1x4x32xf32>
    %12 = vector.shape_cast %11 : vector<1x4x32xf32> to vector<4x32xf32>
    %c0_12 = arith.constant 0 : index
    %c0_13 = arith.constant 0 : index
    %c0_14 = arith.constant 0 : index
    %13 = vector.load %arg3[%c0_12, %c0_13, %c0_14] : memref<2x4x32xf32, #tpu.memory_space<vmem>>, vector<1x4x32xf32>
    %14 = vector.shape_cast %13 : vector<1x4x32xf32> to vector<4x32xf32>
    %cst_15 = arith.constant dense<0.000000e+00> : vector<4x128xf32>
    %15 = tpu.matmul %7, %8, %cst_15 {dimension_numbers = #tpu.dot_dimension_numbers<[1], [0], [0], [1], [0, 0, 1, 1], [], []>} : vector<4x16xf32>, vector<16x128xf32>, vector<4x128xf32> -> vector<4x128xf32>
    %cst_16 = arith.constant dense<0.000000e+00> : vector<4x128xf32>
    %16 = tpu.matmul %12, %9, %cst_16 {dimension_numbers = #tpu.dot_dimension_numbers<[1], [0], [0], [1], [0, 0, 1, 1], [], []>} : vector<4x32xf32>, vector<32x128xf32>, vector<4x128xf32> -> vector<4x128xf32>
    %17 = arith.addf %15, %16 : vector<4x128xf32>
    %18 = vector.broadcast %10 : vector<1x128xf32> to vector<4x128xf32>
    %19 = arith.addf %17, %18 : vector<4x128xf32>
    %20 = tpu.iota {dimensions = array<i32: 1>} : vector<4x128xi32>
    %c64_i32 = arith.constant 64 : i32
    %21 = vector.broadcast %c64_i32 : i32 to vector<4x128xi32>
    %22 = arith.cmpi sge, %20, %21 : vector<4x128xi32>
    %c96_i32 = arith.constant 96 : i32
    %23 = vector.broadcast %c96_i32 : i32 to vector<4x128xi32>
    %24 = arith.cmpi slt, %20, %23 : vector<4x128xi32>
    %25 = arith.andi %22, %24 : vector<4x128xi1>
    %26 = math.tanh %19 : vector<4x128xf32>
    %27 = arith.negf %19 : vector<4x128xf32>
    %28 = math.exp %27 : vector<4x128xf32>
    %cst_17 = arith.constant 1.000000e+00 : f32
    %29 = vector.broadcast %cst_17 : f32 to vector<4x128xf32>
    %30 = arith.addf %29, %28 : vector<4x128xf32>
    %31 = arith.divf %29, %30 : vector<4x128xf32>
    %32 = arith.select %25, %26, %31 : vector<4x128xi1>, vector<4x128xf32>
    %33 = vector.extract_strided_slice %32 {offsets = [0, 0], sizes = [4, 32], strides = [1, 1]} : vector<4x128xf32> to vector<4x32xf32>
    %34 = vector.extract_strided_slice %32 {offsets = [0, 32], sizes = [4, 32], strides = [1, 1]} : vector<4x128xf32> to vector<4x32xf32>
    %35 = vector.extract_strided_slice %32 {offsets = [0, 64], sizes = [4, 32], strides = [1, 1]} : vector<4x128xf32> to vector<4x32xf32>
    %36 = vector.extract_strided_slice %32 {offsets = [0, 96], sizes = [4, 32], strides = [1, 1]} : vector<4x128xf32> to vector<4x32xf32>
    %37 = arith.mulf %34, %14 : vector<4x32xf32>
    %38 = arith.mulf %33, %35 : vector<4x32xf32>
    %39 = arith.addf %37, %38 : vector<4x32xf32>
    %40 = math.tanh %39 : vector<4x32xf32>
    %41 = arith.mulf %36, %40 : vector<4x32xf32>
    %c0_18 = arith.constant 0 : index
    %c0_19 = arith.constant 0 : index
    %c0_20 = arith.constant 0 : index
    %42 = vector.load %arg13[%c0_18, %c0_19, %c0_20] : memref<2x4x32xf32, #tpu.memory_space<vmem>>, vector<1x4x32xf32>
    %43 = vector.shape_cast %42 : vector<1x4x32xf32> to vector<4x32xf32>
    %44 = vector.shape_cast %41 : vector<4x32xf32> to vector<1x4x32xf32>
    tpu.vector_store %arg13[%c0_18, %c0_19, %c0_20], %44 {strides = array<i32>} : memref<2x4x32xf32, #tpu.memory_space<vmem>>, vector<1x4x32xf32>,
    %c0_21 = arith.constant 0 : index
    %c0_22 = arith.constant 0 : index
    %c0_23 = arith.constant 0 : index
    %45 = vector.load %arg14[%c0_21, %c0_22, %c0_23] : memref<2x4x32xf32, #tpu.memory_space<vmem>>, vector<1x4x32xf32>
    %46 = vector.shape_cast %45 : vector<1x4x32xf32> to vector<4x32xf32>
    %47 = vector.shape_cast %39 : vector<4x32xf32> to vector<1x4x32xf32>
    tpu.vector_store %arg14[%c0_21, %c0_22, %c0_23], %47 {strides = array<i32>} : memref<2x4x32xf32, #tpu.memory_space<vmem>>, vector<1x4x32xf32>,
    %c0_24 = arith.constant 0 : index
    %c0_25 = arith.constant 0 : index
    %48 = vector.load %arg7[%c0_24, %c0_25] : memref<32x128xf32, #tpu.memory_space<vmem>>, vector<32x128xf32>
    %c0_26 = arith.constant 0 : index
    %c0_27 = arith.constant 0 : index
    %49 = vector.load %arg8[%c0_26, %c0_27] : memref<32x128xf32, #tpu.memory_space<vmem>>, vector<32x128xf32>
    %c0_28 = arith.constant 0 : index
    %c0_29 = arith.constant 0 : index
    %50 = vector.load %arg9[%c0_28, %c0_29] : memref<1x128xf32, #tpu.memory_space<vmem>>, vector<1x128xf32>
    %c1 = arith.constant 1 : index
    %c0_30 = arith.constant 0 : index
    %c0_31 = arith.constant 0 : index
    %51 = vector.load %arg2[%c1, %c0_30, %c0_31] : memref<2x4x32xf32, #tpu.memory_space<vmem>>, vector<1x4x32xf32>
    %52 = vector.shape_cast %51 : vector<1x4x32xf32> to vector<4x32xf32>
    %c1_32 = arith.constant 1 : index
    %c0_33 = arith.constant 0 : index
    %c0_34 = arith.constant 0 : index
    %53 = vector.load %arg3[%c1_32, %c0_33, %c0_34] : memref<2x4x32xf32, #tpu.memory_space<vmem>>, vector<1x4x32xf32>
    %54 = vector.shape_cast %53 : vector<1x4x32xf32> to vector<4x32xf32>
    %cst_35 = arith.constant dense<0.000000e+00> : vector<4x128xf32>
    %55 = tpu.matmul %41, %48, %cst_35 {dimension_numbers = #tpu.dot_dimension_numbers<[1], [0], [0], [1], [0, 0, 1, 1], [], []>} : vector<4x32xf32>, vector<32x128xf32>, vector<4x128xf32> -> vector<4x128xf32>
    %cst_36 = arith.constant dense<0.000000e+00> : vector<4x128xf32>
    %56 = tpu.matmul %52, %49, %cst_36 {dimension_numbers = #tpu.dot_dimension_numbers<[1], [0], [0], [1], [0, 0, 1, 1], [], []>} : vector<4x32xf32>, vector<32x128xf32>, vector<4x128xf32> -> vector<4x128xf32>
    %57 = arith.addf %55, %56 : vector<4x128xf32>
    %58 = vector.broadcast %50 : vector<1x128xf32> to vector<4x128xf32>
    %59 = arith.addf %57, %58 : vector<4x128xf32>
    %60 = tpu.iota {dimensions = array<i32: 1>} : vector<4x128xi32>
    %c64_i32_37 = arith.constant 64 : i32
    %61 = vector.broadcast %c64_i32_37 : i32 to vector<4x128xi32>
    %62 = arith.cmpi sge, %60, %61 : vector<4x128xi32>
    %c96_i32_38 = arith.constant 96 : i32
    %63 = vector.broadcast %c96_i32_38 : i32 to vector<4x128xi32>
    %64 = arith.cmpi slt, %60, %63 : vector<4x128xi32>
    %65 = arith.andi %62, %64 : vector<4x128xi1>
    %66 = math.tanh %59 : vector<4x128xf32>
    %67 = arith.negf %59 : vector<4x128xf32>
    %68 = math.exp %67 : vector<4x128xf32>
    %cst_39 = arith.constant 1.000000e+00 : f32
    %69 = vector.broadcast %cst_39 : f32 to vector<4x128xf32>
    %70 = arith.addf %69, %68 : vector<4x128xf32>
    %71 = arith.divf %69, %70 : vector<4x128xf32>
    %72 = arith.select %65, %66, %71 : vector<4x128xi1>, vector<4x128xf32>
    %73 = vector.extract_strided_slice %72 {offsets = [0, 0], sizes = [4, 32], strides = [1, 1]} : vector<4x128xf32> to vector<4x32xf32>
    %74 = vector.extract_strided_slice %72 {offsets = [0, 32], sizes = [4, 32], strides = [1, 1]} : vector<4x128xf32> to vector<4x32xf32>
    %75 = vector.extract_strided_slice %72 {offsets = [0, 64], sizes = [4, 32], strides = [1, 1]} : vector<4x128xf32> to vector<4x32xf32>
    %76 = vector.extract_strided_slice %72 {offsets = [0, 96], sizes = [4, 32], strides = [1, 1]} : vector<4x128xf32> to vector<4x32xf32>
    %77 = arith.mulf %74, %54 : vector<4x32xf32>
    %78 = arith.mulf %73, %75 : vector<4x32xf32>
    %79 = arith.addf %77, %78 : vector<4x32xf32>
    %80 = math.tanh %79 : vector<4x32xf32>
    %81 = arith.mulf %76, %80 : vector<4x32xf32>
    %c1_40 = arith.constant 1 : index
    %c0_41 = arith.constant 0 : index
    %c0_42 = arith.constant 0 : index
    %82 = vector.load %arg13[%c1_40, %c0_41, %c0_42] : memref<2x4x32xf32, #tpu.memory_space<vmem>>, vector<1x4x32xf32>
    %83 = vector.shape_cast %82 : vector<1x4x32xf32> to vector<4x32xf32>
    %84 = vector.shape_cast %81 : vector<4x32xf32> to vector<1x4x32xf32>
    tpu.vector_store %arg13[%c1_40, %c0_41, %c0_42], %84 {strides = array<i32>} : memref<2x4x32xf32, #tpu.memory_space<vmem>>, vector<1x4x32xf32>,
    %c1_43 = arith.constant 1 : index
    %c0_44 = arith.constant 0 : index
    %c0_45 = arith.constant 0 : index
    %85 = vector.load %arg14[%c1_43, %c0_44, %c0_45] : memref<2x4x32xf32, #tpu.memory_space<vmem>>, vector<1x4x32xf32>
    %86 = vector.shape_cast %85 : vector<1x4x32xf32> to vector<4x32xf32>
    %87 = vector.shape_cast %79 : vector<4x32xf32> to vector<1x4x32xf32>
    tpu.vector_store %arg14[%c1_43, %c0_44, %c0_45], %87 {strides = array<i32>} : memref<2x4x32xf32, #tpu.memory_space<vmem>>, vector<1x4x32xf32>,
    %c0_46 = arith.constant 0 : index
    %c0_47 = arith.constant 0 : index
    %88 = vector.load %arg10[%c0_46, %c0_47] : memref<32x32xf32, #tpu.memory_space<vmem>>, vector<32x32xf32>
    %cst_48 = arith.constant dense<0.000000e+00> : vector<4x32xf32>
    %89 = tpu.matmul %81, %88, %cst_48 {dimension_numbers = #tpu.dot_dimension_numbers<[1], [0], [0], [1], [0, 0, 1, 1], [], []>} : vector<4x32xf32>, vector<32x32xf32>, vector<4x32xf32> -> vector<4x32xf32>
    %c0_49 = arith.constant 0 : index
    %c0_50 = arith.constant 0 : index
    %90 = vector.load %arg11[%c0_49, %c0_50] : memref<1x32xf32, #tpu.memory_space<vmem>>, vector<1x32xf32>
    %91 = vector.broadcast %90 : vector<1x32xf32> to vector<4x32xf32>
    %92 = arith.addf %89, %91 : vector<4x32xf32>
    %c0_51 = arith.constant 0 : index
    %c0_52 = arith.constant 0 : index
    %93 = vector.load %arg12[%c0_51, %c0_52] : memref<4x32xf32, #tpu.memory_space<vmem>>, vector<4x32xf32>
    tpu.vector_store %arg12[%c0_51, %c0_52], %92 {strides = array<i32>} : memref<4x32xf32, #tpu.memory_space<vmem>>, vector<4x32xf32>,
    return
  }
}

</mosaic_0001>

<bundles_post_ra>
// kernel: _forward.1
= control target key start
LH: loop header
LB: loop body
LE: loop exit
PB: predicated region body
PF: predicated region fallthrough
CT: control target
= control target key end

     0   :  { %20 = vsyncpa [#allocation3], 0  ;;  %s1454_s0 = inlined_call_operand.vmem [shape: s32[4,1], index: 0, kind: input, shape index: {}]   ;;  %s1455_s1 = inlined_call_operand.hbm [shape: f32[32,16], index: 1, kind: input, shape index: {}]   ;;  %s1456_s2 = inlined_call_operand.vmem [shape: f32[2,4,32], index: 2, kind: input, shape index: {}]   ;;  %s1457_s3 = inlined_call_operand.hbm [shape: f32[2,4,32], index: 3, kind: input, shape index: {}]   ;;  %s1458_s4 = inlined_call_operand.hbm [shape: f32[16,128], index: 4, kind: input, shape index: {}]   ;;  %s1459_s5 = inlined_call_operand.hbm [shape: f32[32,128], index: 5, kind: input, shape index: {}]   ;;  %s1460_s6 = inlined_call_operand.vmem [shape: f32[1,128], index: 6, kind: input, shape index: {}]   ;;  %s1461_s7 = inlined_call_operand.hbm [shape: f32[32,128], index: 7, kind: input, shape index: {}]   ;;  %s1462_s8 = inlined_call_operand.hbm [shape: f32[32,128], index: 8, kind: input, shape index: {}]   ;;  %s1463_s9 = inlined_call_operand.vmem [shape: f32[1,128], index: 9, kind: input, shape index: {}]   ;;  %s1464_s10 = inlined_call_operand.vmem [shape: f32[32,32], index: 10, kind: input, shape index: {}]   ;;  %s1465_s11 = inlined_call_operand.vmem [shape: f32[1,32], index: 11, kind: input, shape index: {}]   ;;  %s1466_s12 = inlined_call_operand.hbm [shape: f32[4,32], index: 12, kind: output, shape index: {0}]   ;;  %s1467_s13 = inlined_call_operand.hbm [shape: f32[2,4,32], index: 13, kind: output, shape index: {1}]   ;;  %s1468_s14 = inlined_call_operand.hbm [shape: f32[2,4,32], index: 14, kind: output, shape index: {2}]  }
   0x1   :  { %21 = vsyncpa [#allocation6], 0 }
   0x2   :  { %22 = vsyncpa [#allocation9], 0 }
   0x3   :  { %23 = vsyncpa [#allocation12], 0 }
   0x4   :  { %24 = vsyncpa [#allocation4], 0 }
   0x5   :  { %25 = vsyncpa [#allocation15], 0  ;;  %s1142_s29 = smov [#allocation5]   ;;  %s932_s17 = scalar_lea.hbm %s1457_s3, 128 }
   0x6   :  { %s47_s30 = sshll.u32 %s1142_s29, 4  ;;  %p933_p0 = scmp.ne.s32.totalorder %s1457_s3, %s932_s17  ;;  %s48_s30 = int_to_ptr.vmem [resolvable:$true] %s47_s30 }
   0x7   :  { %p936_p1 = scmp.lt.u32.totalorder %s932_s17, %s1457_s3 }
   0x9   :  { %p938_p2 = pnand %p936_p1, %p933_p0 }
   0xb   :  { %941 = shalt.err (!%p938_p2)
}
   0xc   :  { %s942_s22 = scalar_lea.vmem %s48_s30, 128  ;;  %p947_p4 = scmp.lt.s32.totalorder %s48_s30, %s48_s30 }
   0xd   :  { %p943_p3 = scmp.ne.s32.totalorder %s48_s30, %s942_s22  ;;  %p948_p5 = scmp.lt.s32.totalorder %s942_s22, %s942_s22 }
   0xf   :  { %p949_p6 = por %p948_p5, %p947_p4 }
  0x11   :  { %p950_p7 = pnand %p949_p6, %p943_p3 }
  0x13   :  { %953 = shalt.err (!%p950_p7)
}
  0x14   :  { %s1143_s23 = smov 64   ;;  %s1144_s24 = smov 4  }
  0x15   :  { %53 = dma.hbm_to_vmem [thread:$0]  %s1457_s3, 128, %s48_s30, [#allocation6], %s1143_s23, %s1143_s23, %s1144_s24  }
  0x16   :  { %s1145_s27 = smov [#allocation8]   ;;  %s1146_s29 = smov [#allocation2]  }
  0x17   :  { %s71_s28 = sshll.u32 %s1145_s27, 4  ;;  %s33_s15 = sshll.u32 %s1146_s29, 4  ;;  %s72_s28 = int_to_ptr.vmem [resolvable:$true] %s71_s28  ;;  %s34_s15 = int_to_ptr.vmem [resolvable:$true] %s33_s15 }
  0x18   :  { %s954_s18 = scalar_lea.hbm %s1459_s5, 512 }
  0x19   :  { %p955_p8 = scmp.ne.s32.totalorder %s1459_s5, %s954_s18  ;;  %p958_p9 = scmp.lt.u32.totalorder %s954_s18, %s1459_s5 }
  0x1b   :  { %p960_p10 = pnand %p958_p9, %p955_p8 }
  0x1d   :  { %963 = shalt.err (!%p960_p10)
}
  0x1e   :  { %s964_s3 = scalar_lea.vmem %s72_s28, 512  ;;  %p969_p12 = scmp.lt.s32.totalorder %s72_s28, %s72_s28 }
  0x1f   :  { %p965_p11 = scmp.ne.s32.totalorder %s72_s28, %s964_s3  ;;  %p970_p13 = scmp.lt.s32.totalorder %s964_s3, %s964_s3 }
  0x21   :  { %p971_p0 = por %p970_p13, %p969_p12 }
  0x23   :  { %p972_p1 = pnand %p971_p0, %p965_p11 }
  0x25   :  { %975 = shalt.err (!%p972_p1)
}
  0x26   :  { %s1147_s30 = smov 128   ;;  %s1148_s25 = smov 8  }
  0x27   :  { %77 = dma.hbm_to_vmem [thread:$0]  %s1459_s5, 512, %s72_s28, [#allocation9], %s1147_s30, %s1147_s30, %s1148_s25  }
  0x28   :  { %s976_s17 = scalar_lea.hbm %s1455_s1, 512 }
  0x29   :  { %p977_p2 = scmp.ne.s32.totalorder %s1455_s1, %s976_s17  ;;  %p980_p3 = scmp.lt.u32.totalorder %s976_s17, %s1455_s1 }
  0x2b   :  { %p982_p4 = pnand %p980_p3, %p977_p2 }
  0x2d   :  { %985 = shalt.err (!%p982_p4)
}
  0x2e   :  { %s986_s22 = scalar_lea.vmem %s34_s15, 512  ;;  %p991_p6 = scmp.lt.s32.totalorder %s34_s15, %s34_s15 }
  0x2f   :  { %p987_p5 = scmp.ne.s32.totalorder %s34_s15, %s986_s22  ;;  %p992_p7 = scmp.lt.s32.totalorder %s986_s22, %s986_s22 }
  0x31   :  { %p993_p8 = por %p992_p7, %p991_p6 }
  0x33   :  { %p994_p9 = pnand %p993_p8, %p987_p5 }
  0x35   :  { %997 = shalt.err (!%p994_p9)
}
  0x36   :  { %39 = dma.hbm_to_vmem [thread:$0]  %s1455_s1, 512, %s34_s15, [#allocation3], %s1147_s30, %s1147_s30, %s1148_s25  }
  0x37   :  { %s1149_s3 = smov [#allocation7]   ;;  %s1150_s27 = smov [#allocation10]  }
  0x38   :  { %s59_s26 = sshll.u32 %s1149_s3, 4  ;;  %s85_s29 = sshll.u32 %s1150_s27, 4  ;;  %s60_s26 = int_to_ptr.vmem [resolvable:$true] %s59_s26  ;;  %s86_s29 = int_to_ptr.vmem [resolvable:$true] %s85_s29 }
  0x39   :  { %s998_s18 = scalar_lea.hbm %s1458_s4, 256 }
  0x3a   :  { %p999_p10 = scmp.ne.s32.totalorder %s1458_s4, %s998_s18  ;;  %p1002_p11 = scmp.lt.u32.totalorder %s998_s18, %s1458_s4 }
  0x3c   :  { %p1004_p12 = pnand %p1002_p11, %p999_p10 }
  0x3e   :  { %1007 = shalt.err (!%p1004_p12)
}
  0x3f   :  { %s1008_s1 = scalar_lea.vmem %s60_s26, 256  ;;  %p1013_p0 = scmp.lt.s32.totalorder %s60_s26, %s60_s26 }
  0x40   :  { %p1009_p13 = scmp.ne.s32.totalorder %s60_s26, %s1008_s1  ;;  %p1014_p1 = scmp.lt.s32.totalorder %s1008_s1, %s1008_s1 }
  0x42   :  { %p1015_p2 = por %p1014_p1, %p1013_p0 }
  0x44   :  { %p1016_p3 = pnand %p1015_p2, %p1009_p13 }
  0x46   :  { %1019 = shalt.err (!%p1016_p3)
}
  0x47   :  { %65 = dma.hbm_to_vmem [thread:$0]  %s1458_s4, 256, %s60_s26, [#allocation6], %s1147_s30, %s1147_s30, %s1148_s25  }
  0x48   :  { %s1020_s27 = scalar_lea.hbm %s1461_s7, 512 }
  0x49   :  { %p1021_p4 = scmp.ne.s32.totalorder %s1461_s7, %s1020_s27  ;;  %p1024_p5 = scmp.lt.u32.totalorder %s1020_s27, %s1461_s7 }
  0x4b   :  { %p1026_p6 = pnand %p1024_p5, %p1021_p4 }
  0x4d   :  { %1029 = shalt.err (!%p1026_p6)
}
  0x4e   :  { %s1030_s20 = scalar_lea.vmem %s86_s29, 512  ;;  %p1035_p8 = scmp.lt.s32.totalorder %s86_s29, %s86_s29 }
  0x4f   :  { %p1031_p7 = scmp.ne.s32.totalorder %s86_s29, %s1030_s20  ;;  %p1036_p9 = scmp.lt.s32.totalorder %s1030_s20, %s1030_s20 }
  0x51   :  { %p1037_p10 = por %p1036_p9, %p1035_p8 }
  0x53   :  { %p1038_p11 = pnand %p1037_p10, %p1031_p7 }
  0x55   :  { %1041 = shalt.err (!%p1038_p11)
}
  0x56   :  { %91 = dma.hbm_to_vmem [thread:$0]  %s1461_s7, 512, %s86_s29, [#allocation9], %s1147_s30, %s1147_s30, %s1148_s25  }
  0x57   :  { %s1151_s21 = smov [#allocation11]   ;;  %s1042_s5 = scalar_lea.hbm %s1462_s8, 512 }
  0x58   :  { %s97_s22 = sshll.u32 %s1151_s21, 4  ;;  %p1043_p12 = scmp.ne.s32.totalorder %s1462_s8, %s1042_s5  ;;  %s98_s22 = int_to_ptr.vmem [resolvable:$true] %s97_s22 }
  0x59   :  { %p1046_p13 = scmp.lt.u32.totalorder %s1042_s5, %s1462_s8 }
  0x5b   :  { %p1048_p0 = pnand %p1046_p13, %p1043_p12 }
  0x5d   :  { %1051 = shalt.err (!%p1048_p0)
}
  0x5e   :  { %s1052_s17 = scalar_lea.vmem %s98_s22, 512  ;;  %p1057_p2 = scmp.lt.s32.totalorder %s98_s22, %s98_s22 }
  0x5f   :  { %p1053_p1 = scmp.ne.s32.totalorder %s98_s22, %s1052_s17  ;;  %p1058_p3 = scmp.lt.s32.totalorder %s1052_s17, %s1052_s17 }
  0x61   :  { %p1059_p4 = por %p1058_p3, %p1057_p2 }
  0x63   :  { %p1060_p5 = pnand %p1059_p4, %p1053_p1 }
  0x65   :  { %1063 = shalt.err (!%p1060_p5)
}
  0x66   :  { %103 = dma.hbm_to_vmem [thread:$0]  %s1462_s8, 512, %s98_s22, [#allocation12], %s1147_s30, %s1147_s30, %s1148_s25  }
  0x67   :  { %1130 = dma.done.wait [#allocation3], 512  }
  0x68   :  { %1131 = vsyncadd [#allocation3], 4294966784 }
  0x69   :  { %1132 = dma.done.wait [#allocation6], 384  }
  0x6a   :  { %1133 = vsyncadd [#allocation6], 4294966912 }
  0x6b   :  { %1134 = dma.done.wait [#allocation9], 1024  }
  0x6c   :  { %1135 = vsyncadd [#allocation9], 4294966272 }
  0x6d   :  { %1136 = dma.done.wait [#allocation12], 512  }
  0x6e   :  { %1137 = vsyncadd [#allocation12], 4294966784  ;;  %v1152_v0 = vmov 0   ;;  %v1153_v1 = vmov 0.0|0.0   ;;  %v128_v2 = vld [vmem:[%s1454_s0] sm:$0xf]  ;;  %v129_v16 = vlaneseq }
  0x6f   :  { %915 = vset.pattern.permute.xlu0 %v1152_v0  ;;  %863 = vmatprep.subr.bf16.mxu0 %v1153_v1  ;;  %v137_v3 = vld [vmem:[#allocation2] sm:$0xff]  ;;  %v138_v4 = vld [vmem:[#allocation2 + $0x8] sm:$0xff]  ;;  %v139_v6 = vld [vmem:[#allocation2 + $0x10] sm:$0xff]  ;;  %vm1154_vm0 = vmmov 0   ;;  %v1155_v8 = vmov 0.0   ;;  %vm141_vm1 = vcmask 261120  }
  0x70   :  { %869 = vmatprep.subr.bf16.mxu1 %v1153_v1  ;;  %132 = vperm.xlu0 %915, %v128_v2   ;;  %v864_v5 = vpack.c.bf16 %v138_v4, %v137_v3  ;;  %v140_v7 = vld [vmem:[#allocation2 + $0x18] sm:$0xff]  ;;  %v218_v11 = vld [vmem:[#allocation8 + $0x8] sm:$0xff]  ;;  %v219_v12 = vld [vmem:[#allocation8 + $0x10] sm:$0xff]  ;;  %v130_v17 = vand.u32 127, %v129_v16  ;;  %s1156_s30 = smov 32   ;;  %vm297_vm3 = vcmask 130048  }
  0x71   :  { %809 = vmatprep.mubr.msk.f32.mxu0 %vm1154_vm0, %v1155_v8  ;;  %820 = vmatprep.mubr.msk.f32.mxu1 %vm1154_vm0, %v1155_v8  ;;  %v867_v9 = vpack.c.bf16 %v140_v7, %v139_v6  ;;  %v217_v10 = vld [vmem:[#allocation8] sm:$0xff]  ;;  %v220_v14 = vld [vmem:[#allocation8 + $0x18] sm:$0xff]  ;;  %v215_v18 = vld [vmem:[#allocation7] sm:$0xff]  ;;  %vm414_vm7 = vcmask 257024   ;;  %s1157_s27 = smov 96  }
  0x72   :  { %865 = vmatpush3.bf16.msra.mxu0 %v864_v5  ;;  %v870_v13 = vpack.c.bf16 %v218_v11, %v217_v10  ;;  %v873_v15 = vpack.c.bf16 %v220_v14, %v219_v12  ;;  %v216_v19 = vld [vmem:[#allocation7 + $0x8] sm:$0xff]  ;;  %v222_v23 = vld [vmem:[%s1456_s2] sm:$0xf]  ;;  %vm378_vm4 = vcmp.ge.s32.totalorder %v130_v17, 64  ;;  %vm379_vm5 = vcmp.lt.s32.totalorder %v130_v17, 96  ;;  %v425_v47 = vld [vmem:[#allocation11] sm:$0xff] }
  0x73   :  { %866 = vmatprep.subr.bf16.mxu0 %v1153_v1  ;;  %v876_v21 = vpack.c.bf16 %v216_v19, %v215_v18  ;;  %v223_v24 = vld [vmem:[#allocation5] sm:$0xf]  ;;  %vm1356_vm6 = vmand %vm378_vm4, %vm379_vm5  ;;  %v421_v49 = vld [vmem:[#allocation10] sm:$0xff] }
  0x74   :  { %871 = vmatpush3.bf16.msra.mxu1 %v870_v13  ;;  %390 = vrot.lane.b32.xlu1 %v223_v24, %s1156_s30  ;;  %v764_v29 = vld [vmem:[%s1460_s6] ss:$0 sm:$0xff]  ;;  %v427_v52 = vld [vmem:[#allocation11 + $0x10] sm:$0xff]  ;;  %v428_v53 = vld [vmem:[#allocation11 + $0x18] sm:$0xff] }
  0x75   :  { %872 = vmatprep.subr.bf16.mxu1 %v1153_v1  ;;  %v426_v48 = vld [vmem:[#allocation11 + $0x8] sm:$0xff]  ;;  %v423_v55 = vld [vmem:[#allocation10 + $0x10] sm:$0xff]  ;;  %v424_v56 = vld [vmem:[#allocation10 + $0x18] sm:$0xff]  ;;  %v882_v57 = vpack.c.bf16 %v428_v53, %v427_v52 }
  0x76   :  { %868 = vmatpush3.bf16.msra.mxu0 %v867_v9  ;;  %v879_v50 = vpack.c.bf16 %v426_v48, %v425_v47  ;;  %v422_v51 = vld [vmem:[#allocation10 + $0x8] sm:$0xff]  ;;  %v888_v58 = vpack.c.bf16 %v424_v56, %v423_v55 }
  0x77   :  { %875 = vmatprep.subr.bf16.mxu0 %v1153_v1  ;;  %v885_v54 = vpack.c.bf16 %v422_v51, %v421_v49  ;;  %v766_v59 = vld [vmem:[%s1456_s2 + $0x4] sm:$0xf]  ;;  %v769_v4 = vld [vmem:[%s1463_s9] ss:$0 sm:$0xff] }
  0x78   :  { %874 = vmatpush3.bf16.msra.mxu1 %v873_v15  ;;  %v433_v63 = vld [vmem:[#allocation5 + $0x4] sm:$0xf] }
  0x79   :  { %878 = vmatprep.subr.bf16.mxu1 %v1153_v1 }
  0x7b   :  { %821 = vmatmul.mubr.msk.f32.vlgmr.msra.gmra.mrb[0].mxu1 %vm141_vm1, %v222_v23  ;;  %v629_v23 = vld [vmem:[%s1464_s10 + $0x10] sm:$0xff] }
  0x7c   :  { %838 = vmatprep.mubr.msk.f32.mxu1 %vm1154_vm0, %v1155_v8  ;;  %880 = vmatpush3.bf16.msra.mxu1 %v879_v50 }
  0x7d   :  { %881 = vmatprep.subr.bf16.mxu1 %v1153_v1 }
  0x80   :  { %883 = vmatpush3.bf16.msra.mxu1 %v882_v57 }
  0x81   :  { %890 = vmatprep.subr.bf16.mxu1 %v1153_v1 }
  0x83   :  { %839 = vmatmul.mubr.msk.f32.vlgmr.msra.gmra.mrb[2].mxu1 %vm141_vm1, %v766_v59 }
  0x84   :  { %860 = vmatprep.mubr.msk.f32.mxu1 %vm1154_vm0, %v1155_v8 }
  0xe6   :  { %v391_v43 = vpop.permute.xlu1 %390 }
  0xef   :  { %v133_v20 = vpop.permute.xlu0 %132 }
  0xf0   :  { %vm134_vm2 = vcmp.eq.s32.totalorder %v130_v17, %v133_v20 }
  0xf1   :  { %v760_v22 = vsel %vm134_vm2, 1.0, %v1155_v8 }
  0xf2   :  { %810 = vmatmul.mubr.msk.f32.vlgmr.msra.gmra.mrb[0].mxu0 %vm141_vm1, %v760_v22  ;;  %v628_v22 = vld [vmem:[%s1464_s10 + $0x8] sm:$0xff] }
  0xf3   :  { %877 = vmatpush3.bf16.msra.mxu0 %v876_v21  ;;  %827 = vmatprep.mubr.msk.f32.mxu0 %vm1154_vm0, %v1155_v8  ;;  %v627_v21 = vld [vmem:[%s1464_s10] sm:$0xff] }
  0xf4   :  { %884 = vmatprep.subr.bf16.mxu0 %v1153_v1  ;;  %v891_v24 = vpack.c.bf16 %v628_v22, %v627_v21 }
  0xf6   :  { %892 = vmatpush3.bf16.msra.mxu1 %v891_v24 }
  0xf7   :  { %893 = vmatprep.subr.bf16.mxu1 %v1153_v1 }
 0x14e   :  { %v293_v27 = vpop.f32.mrb[0].mxu1 }
 0x14f   :  { %v822_v28 = vpop.f32.mrb[1].mxu1 }
 0x156   :  { %v503_v0 = vpop.f32.mrb[2].mxu1 }
 0x157   :  { %v840_v2 = vpop.f32.mrb[3].mxu1 }
 0x1c5   :  { %v211_v25 = vpop.f32.mrb[0].mxu0 }
 0x1c6   :  { %v811_v26 = vpop.f32.mrb[1].mxu0  ;;  %828 = vmatmul.mubr.msk.f32.vlgmr.msra.gmra.mrb[2].mxu0 %vm297_vm3, %v211_v25  ;;  %v630_v25 = vld [vmem:[%s1464_s10 + $0x18] sm:$0xff]  ;;  %s1158_s10 = smov [#allocation14]  }
 0x1c7   :  { %849 = vmatprep.mubr.msk.f32.mxu0 %vm1154_vm0, %v1155_v8  ;;  %886 = vmatpush3.bf16.msra.mxu0 %v885_v54  ;;  %v894_v26 = vpack.c.bf16 %v630_v25, %v629_v23  ;;  %s726_s16 = sshll.u32 %s1158_s10, 4  ;;  %s727_s16 = int_to_ptr.vmem [resolvable:$true] %s726_s16 }
 0x1c8   :  { %887 = vmatprep.subr.bf16.mxu0 %v1153_v1  ;;  %s1064_s17 = scalar_lea.vmem %s727_s16, 128  ;;  %p1069_p7 = scmp.lt.s32.totalorder %s727_s16, %s727_s16 }
 0x1c9   :  { %895 = vmatpush3.bf16.msra.mxu1 %v894_v26  ;;  %p1065_p6 = scmp.ne.s32.totalorder %s727_s16, %s1064_s17  ;;  %p1070_p8 = scmp.lt.s32.totalorder %s1064_s17, %s1064_s17 }
 0x1cb   :  { %889 = vmatpush3.bf16.msra.mxu0 %v888_v58  ;;  %p1071_p9 = por %p1070_p8, %p1069_p7 }
 0x1cd   :  { %p1072_p10 = pnand %p1071_p9, %p1065_p6 }
 0x299   :  { %v367_v30 = vpop.f32.mrb[2].mxu0 }
 0x29a   :  { %v368_v31 = vadd.f32 %v367_v30, %v293_v27  ;;  %v829_v32 = vpop.f32.mrb[3].mxu0 }
 0x29c   :  { %v377_v33 = vadd.f32 %v764_v29, %v368_v31 }
 0x29e   :  { %v765_v34 = vmul.f32 -1.442695, %v377_v33 }
 0x2a0   :  { %916 = vpow2.f32 %v765_v34 }
 0x2a1   :  { %918 = vtanh.f32 %v377_v33 }
 0x2aa   :  { %v917_v35 = vpop.eup %916 }
 0x2ab   :  { %v385_v36 = vadd.f32 1.0, %v917_v35  ;;  %v919_v38 = vpop.eup %918 }
 0x2ad   :  { %920 = vrcp.f32 %v385_v36 }
 0x2b7   :  { %v921_v39 = vpop.eup %920 }
 0x2b8   :  { %v388_v40 = vsel %vm1356_vm6, %v919_v38, %v921_v39 }
 0x2b9   :  { %395 = vrot.lane.b32.xlu0 %v388_v40, %s1143_s23  ;;  %v393_v44 = vmul.f32 %v391_v43, %v388_v40 }
 0x32b   :  { %v396_v41 = vpop.permute.xlu0 %395 }
 0x32c   :  { %v398_v42 = vmul.f32 %v396_v41, %v388_v40 }
 0x32e   :  { %400 = vrot.lane.b32.xlu1 %v398_v42, %s1156_s30 }
 0x3a0   :  { %v401_v45 = vpop.permute.xlu1 %400 }
 0x3a1   :  { %v1364_v46 = vadd.f32 %v401_v45, %v393_v44 }
 0x3a3   :  { %922 = vtanh.f32 %v1364_v46 }
 0x3ad   :  { %v923_v60 = vpop.eup %922 }
 0x3ae   :  { %406 = vrot.lane.b32.xlu0 %v923_v60, %s1143_s23 }
 0x420   :  { %v407_v61 = vpop.permute.xlu0 %406 }
 0x421   :  { %v409_v62 = vmul.f32 %v407_v61, %v388_v40 }
 0x423   :  { %411 = vrot.lane.b32.xlu1 %v409_v62, %s1156_s30 }
 0x427   :  { %595 = vrot.lane.b32.xlu1 %v433_v63, %s1156_s30 }
 0x495   :  { %v412_v3 = vpop.permute.xlu1 %411 }
 0x496   :  { %415 = vst.msk [vmem:[#allocation14] sm:$0xf] %vm414_vm7, %v412_v3  ;;  %850 = vmatmul.mubr.msk.f32.vlgmr.msra.gmra.mrb[4].mxu0 %vm141_vm1, %v412_v3 }
 0x499   :  { %v596_v17 = vpop.permute.xlu1 %595 }
 0x569   :  { %v575_v5 = vpop.f32.mrb[4].mxu0 }
 0x56a   :  { %v576_v6 = vadd.f32 %v575_v5, %v503_v0  ;;  %v851_v7 = vpop.f32.mrb[5].mxu0 }
 0x56c   :  { %v585_v8 = vadd.f32 %v769_v4, %v576_v6 }
 0x56e   :  { %v770_v9 = vmul.f32 -1.442695, %v585_v8 }
 0x570   :  { %924 = vpow2.f32 %v770_v9 }
 0x571   :  { %926 = vtanh.f32 %v585_v8 }
 0x57a   :  { %v925_v10 = vpop.eup %924 }
 0x57b   :  { %v590_v11 = vadd.f32 1.0, %v925_v10  ;;  %v927_v12 = vpop.eup %926 }
 0x57d   :  { %928 = vrcp.f32 %v590_v11 }
 0x587   :  { %v929_v13 = vpop.eup %928 }
 0x588   :  { %v593_v14 = vsel %vm1356_vm6, %v927_v12, %v929_v13 }
 0x589   :  { %600 = vrot.lane.b32.xlu0 %v593_v14, %s1143_s23  ;;  %v598_v18 = vmul.f32 %v596_v17, %v593_v14 }
 0x5fb   :  { %v601_v15 = vpop.permute.xlu0 %600 }
 0x5fc   :  { %v603_v16 = vmul.f32 %v601_v15, %v593_v14 }
 0x5fe   :  { %605 = vrot.lane.b32.xlu0 %v603_v16, %s1156_s30 }
 0x670   :  { %v606_v19 = vpop.permute.xlu0 %605 }
 0x671   :  { %v608_v20 = vadd.f32 %v606_v19, %v598_v18 }
 0x673   :  { %930 = vtanh.f32 %v608_v20 }
 0x67d   :  { %v931_v27 = vpop.eup %930 }
 0x67e   :  { %611 = vrot.lane.b32.xlu1 %v931_v27, %s1143_s23 }
 0x682   :  { %417 = vrot.lane.b32.xlu1 %v1364_v46, %s1157_s27 }
 0x6f0   :  { %v612_v28 = vpop.permute.xlu1 %611 }
 0x6f1   :  { %v614_v29 = vmul.f32 %v612_v28, %v593_v14 }
 0x6f3   :  { %616 = vrot.lane.b32.xlu0 %v614_v29, %s1156_s30 }
 0x6f4   :  { %v418_v30 = vpop.permute.xlu1 %417 }
 0x6f5   :  { %420 = vst.msk [vmem:[#allocation16] sm:$0xf] %vm414_vm7, %v418_v30 }
 0x6f7   :  { %622 = vrot.lane.b32.xlu0 %v608_v20, %s1157_s27 }
 0x765   :  { %v617_v31 = vpop.permute.xlu0 %616 }
 0x766   :  { %620 = vst.msk [vmem:[#allocation14 + $0x4] sm:$0xf] %vm414_vm7, %v617_v31  ;;  %861 = vmatmul.mubr.msk.f32.vlgmr.msra.gmra.mrb[4].mxu1 %vm141_vm1, %v617_v31 }
 0x769   :  { %v623_v1 = vpop.permute.xlu0 %622 }
 0x76a   :  { %626 = vst.msk [vmem:[#allocation16 + $0x4] sm:$0xf] %vm414_vm7, %v623_v1 }
 0x76b   :  { %1075 = shalt.err (!%p1072_p10)
}
 0x76c   :  { %s1076_s18 = scalar_lea.hbm %s1467_s13, 128 }
 0x76d   :  { %p1077_p11 = scmp.ne.s32.totalorder %s1467_s13, %s1076_s18  ;;  %p1080_p12 = scmp.lt.u32.totalorder %s1076_s18, %s1467_s13 }
 0x76f   :  { %p1082_p13 = pnand %p1080_p12, %p1077_p11 }
 0x771   :  { %1085 = shalt.err (!%p1082_p13)
}
 0x772   :  { %732 = dma.vmem_to_hbm [thread:$0]  %s727_s16, 128, %s1467_s13, [#allocation15], %s1143_s23, %s1143_s23, %s1144_s24  }
 0x773   :  { %s1159_s6 = smov [#allocation16]  }
 0x774   :  { %s738_s4 = sshll.u32 %s1159_s6, 4  ;;  %s739_s4 = int_to_ptr.vmem [resolvable:$true] %s738_s4 }
 0x775   :  { %s1086_s2 = scalar_lea.vmem %s739_s4, 128  ;;  %p1091_p1 = scmp.lt.s32.totalorder %s739_s4, %s739_s4 }
 0x776   :  { %p1087_p0 = scmp.ne.s32.totalorder %s739_s4, %s1086_s2  ;;  %p1092_p2 = scmp.lt.s32.totalorder %s1086_s2, %s1086_s2 }
 0x778   :  { %p1093_p3 = por %p1092_p2, %p1091_p1 }
 0x77a   :  { %p1094_p4 = pnand %p1093_p3, %p1087_p0 }
 0x77c   :  { %1097 = shalt.err (!%p1094_p4)
}
 0x77d   :  { %s1098_s21 = scalar_lea.hbm %s1468_s14, 128 }
 0x77e   :  { %p1099_p5 = scmp.ne.s32.totalorder %s1468_s14, %s1098_s21  ;;  %p1102_p6 = scmp.lt.u32.totalorder %s1098_s21, %s1468_s14 }
 0x780   :  { %p1104_p7 = pnand %p1102_p6, %p1099_p5 }
 0x782   :  { %1107 = shalt.err (!%p1104_p7)
}
 0x783   :  { %744 = dma.vmem_to_hbm [thread:$0]  %s739_s4, 128, %s1468_s14, [#allocation15], %s1143_s23, %s1143_s23, %s1144_s24  }
 0x784   :  { %v771_v32 = vld [vmem:[%s1465_s11] ss:$0 sm:$0xff]  ;;  %s1160_s10 = smov [#allocation13]  }
 0x785   :  { %s717_s16 = sshll.u32 %s1160_s10, 4  ;;  %s718_s16 = int_to_ptr.vmem [resolvable:$true] %s717_s16 }
 0x786   :  { %s1108_s17 = scalar_lea.vmem %s718_s16, 64  ;;  %p1113_p9 = scmp.lt.s32.totalorder %s718_s16, %s718_s16 }
 0x787   :  { %p1109_p8 = scmp.ne.s32.totalorder %s718_s16, %s1108_s17  ;;  %p1114_p10 = scmp.lt.s32.totalorder %s1108_s17, %s1108_s17 }
 0x789   :  { %p1115_p11 = por %p1114_p10, %p1113_p9 }
 0x78b   :  { %p1116_p12 = pnand %p1115_p11, %p1109_p8 }
 0x839   :  { %v706_v33 = vpop.f32.mrb[4].mxu1 }
 0x83a   :  { %v707_v34 = vadd.f32 %v771_v32, %v706_v33  ;;  %v862_v35 = vpop.f32.mrb[5].mxu1 }
 0x83c   :  { %710 = vst.msk [vmem:[#allocation13] sm:$0xf] %vm414_vm7, %v707_v34 }
 0x83d   :  { %1119 = shalt.err (!%p1116_p12)
}
 0x83e   :  { %s1120_s24 = scalar_lea.hbm %s1466_s12, 64 }
 0x83f   :  { %p1121_p13 = scmp.ne.s32.totalorder %s1466_s12, %s1120_s24  ;;  %p1124_p0 = scmp.lt.u32.totalorder %s1120_s24, %s1466_s12 }
 0x841   :  { %p1126_p1 = pnand %p1124_p0, %p1121_p13 }
 0x843   :  { %1129 = shalt.err (!%p1126_p1)
}
 0x844   :  { %720 = dma.vmem_to_hbm [thread:$0]  %s718_s16, 64, %s1466_s12, [#allocation4]  }
 0x845   :  { %1138 = dma.done.wait [#allocation4], 64  }
 0x846   :  { %1139 = vsyncadd [#allocation4], 4294967232 }
 0x847   :  { %1140 = dma.done.wait [#allocation15], 256  }
 0x848   :  { %1141 = vsyncadd [#allocation15], 4294967040 }
 0x849   :  { %754 = vsyncpa [#allocation3], 1 }
 0x84a   :  { %755 = vsyncpa [#allocation6], 1 }
 0x84b   :  { %756 = vsyncpa [#allocation9], 1 }
 0x84c   :  { %757 = vsyncpa [#allocation12], 1 }
 0x84d   :  { %758 = vsyncpa [#allocation4], 1 }
 0x84e   :  { %759 = vsyncpa [#allocation15], 1 }

</bundles_post_ra>
